<compile_context>
chip_gen: v7x
topology: tpu7x:2x2x1
jax: 0.10.0
libtpu: 0.0.40
codegen_flags: <defaults>
</compile_context>

<pallas_src>
import math
import functools

import jax
import jax.numpy as jnp
from jax.experimental import pallas as pl
from jax.experimental.pallas import tpu as pltpu


_VMEM_LIMIT = 64 * 1024 * 1024  # explicit scoped-VMEM ceiling (<= physical on all gens)


# --------------------------------------------------------------------------------------
# Tile helpers
# --------------------------------------------------------------------------------------

def _granule(dtype):
    return 16 if dtype == jnp.bfloat16 else 8


def _pick_tile(n, pref, granule=8):
    """Largest multiple-of-`granule` tile <= pref that divides n, else the full extent."""
    if n <= pref:
        return n
    t = (pref // granule) * granule
    while t >= granule:
        if n % t == 0:
            return t
        t -= granule
    # TODO(synk): non-divisible n falls back to a single full-extent block; for very
    # large awkward S this should switch to a masked tail tile instead.
    return n


def _pick_head_tile(nh, dims, pref_cols=2048):
    """Largest divisor th of nh s.t. every th*d column slab is lane-aligned (%128==0,
    or th==nh i.e. the full array) and th*max(dims) stays a modest weight slab."""
    for th in range(nh, 0, -1):
        if nh % th:
            continue
        cols_ok = (th == nh) or all((th * d) % 128 == 0 for d in dims)
        if cols_ok and th * max(dims) <= pref_cols:
            return th
    return nh


# --------------------------------------------------------------------------------------
# Fused projection kernels: down-proj -> RMSNorm -> up-proj (head-tiled output columns)
# --------------------------------------------------------------------------------------

def _fused_q_kernel(x_ref, wd_ref, bd_ref, wn_ref, bn_ref, wr_ref, br_ref,
                    qn_ref, qr_ref, t_ref, *, eps):
    # Latent (down-proj + RMSNorm) computed once per row tile, cached in VMEM scratch.
    @pl.when(pl.program_id(1) == 0)
    def _():
        t = jnp.dot(x_ref[...], wd_ref[...],
                    preferred_element_type=jnp.float32) + bd_ref[...]
        t = t * jax.lax.rsqrt(jnp.mean(t * t, axis=-1, keepdims=True) + eps)
        t_ref[...] = t.astype(t_ref.dtype)

    t = t_ref[...]
    qn_ref[...] = (jnp.dot(t, wn_ref[...], preferred_element_type=jnp.float32)
                   + bn_ref[...]).astype(qn_ref.dtype)
    qr_ref[...] = (jnp.dot(t, wr_ref[...], preferred_element_type=jnp.float32)
                   + br_ref[...]).astype(qr_ref.dtype)


def fused_q_projection(x2d, wd, bd, wn, bn, wr, br, nh, *, tm=256, eps=1e-6):
    M, H = x2d.shape
    R = wd.shape[1]
    Nn, Nr = wn.shape[1], wr.shape[1]
    dn, dr = Nn // nh, Nr // nh
    th = _pick_head_tile(nh, (dn, dr))
    tm = _pick_tile(M, tm, _granule(x2d.dtype))
    cn, cr = th * dn, th * dr
    kern = functools.partial(_fused_q_kernel, eps=eps)
    return pl.pallas_call(
        kern,
        out_shape=(jax.ShapeDtypeStruct((M, Nn), x2d.dtype),
                   jax.ShapeDtypeStruct((M, Nr), x2d.dtype)),
        grid=(M // tm, nh // th),
        in_specs=[
            pl.BlockSpec((tm, H), lambda i, h: (i, 0)),
            pl.BlockSpec((H, R), lambda i, h: (0, 0), pipeline_mode=pl.Buffered(1)),
            pl.BlockSpec((1, R), lambda i, h: (0, 0), pipeline_mode=pl.Buffered(1)),
            pl.BlockSpec((R, cn), lambda i, h: (0, h)),
            pl.BlockSpec((1, cn), lambda i, h: (0, h)),
            pl.BlockSpec((R, cr), lambda i, h: (0, h)),
            pl.BlockSpec((1, cr), lambda i, h: (0, h)),
        ],
        out_specs=[pl.BlockSpec((tm, cn), lambda i, h: (i, h)),
                   pl.BlockSpec((tm, cr), lambda i, h: (i, h))],
        scratch_shapes=[pltpu.VMEM((tm, R), x2d.dtype)],   # normalized latent cache
        compiler_params=pltpu.CompilerParams(
            dimension_semantics=("parallel", "arbitrary"),
            vmem_limit_bytes=_VMEM_LIMIT),
    )(x2d, wd, bd, wn, bn, wr, br)


def _fused_kv_kernel(x_ref, wdr_ref, bdr_ref, wdc_ref, bdc_ref,
                     wkn_ref, bkn_ref, wv_ref, bv_ref,
                     kr_ref, kn_ref, v_ref, c_ref, *, eps):
    @pl.when(pl.program_id(1) == 0)
    def _():
        x = x_ref[...]
        # rope part of the down projection is NOT normalized (matches reference split)
        kr_ref[...] = (jnp.dot(x, wdr_ref[...], preferred_element_type=jnp.float32)
                       + bdr_ref[...]).astype(kr_ref.dtype)
        c = jnp.dot(x, wdc_ref[...], preferred_element_type=jnp.float32) + bdc_ref[...]
        c = c * jax.lax.rsqrt(jnp.mean(c * c, axis=-1, keepdims=True) + eps)
        c_ref[...] = c.astype(c_ref.dtype)

    c = c_ref[...]
    kn_ref[...] = (jnp.dot(c, wkn_ref[...], preferred_element_type=jnp.float32)
                   + bkn_ref[...]).astype(kn_ref.dtype)
    v_ref[...] = (jnp.dot(c, wv_ref[...], preferred_element_type=jnp.float32)
                  + bv_ref[...]).astype(v_ref.dtype)


def fused_kv_projection(x2d, wdr, bdr, wdc, bdc, wkn, bkn, wv, bv, nh, *, tm=256, eps=1e-6):
    M, H = x2d.shape
    dr = wdr.shape[1]
    R = wdc.shape[1]
    Nk, Nv = wkn.shape[1], wv.shape[1]
    dn, dv = Nk // nh, Nv // nh
    th = _pick_head_tile(nh, (dn, dv))
    tm = _pick_tile(M, tm, _granule(x2d.dtype))
    cn, cv = th * dn, th * dv
    kern = functools.partial(_fused_kv_kernel, eps=eps)
    return pl.pallas_call(
        kern,
        out_shape=(jax.ShapeDtypeStruct((M, dr), x2d.dtype),
                   jax.ShapeDtypeStruct((M, Nk), x2d.dtype),
                   jax.ShapeDtypeStruct((M, Nv), x2d.dtype)),
        grid=(M // tm, nh // th),
        in_specs=[
            pl.BlockSpec((tm, H), lambda i, h: (i, 0)),
            pl.BlockSpec((H, dr), lambda i, h: (0, 0), pipeline_mode=pl.Buffered(1)),
            pl.BlockSpec((1, dr), lambda i, h: (0, 0), pipeline_mode=pl.Buffered(1)),
            pl.BlockSpec((H, R), lambda i, h: (0, 0), pipeline_mode=pl.Buffered(1)),
            pl.BlockSpec((1, R), lambda i, h: (0, 0), pipeline_mode=pl.Buffered(1)),
            pl.BlockSpec((R, cn), lambda i, h: (0, h)),
            pl.BlockSpec((1, cn), lambda i, h: (0, h)),
            pl.BlockSpec((R, cv), lambda i, h: (0, h)),
            pl.BlockSpec((1, cv), lambda i, h: (0, h)),
        ],
        out_specs=[pl.BlockSpec((tm, dr), lambda i, h: (i, 0)),   # written at h==0 only
                   pl.BlockSpec((tm, cn), lambda i, h: (i, h)),
                   pl.BlockSpec((tm, cv), lambda i, h: (i, h))],
        scratch_shapes=[pltpu.VMEM((tm, R), x2d.dtype)],          # normalized latent cache
        compiler_params=pltpu.CompilerParams(
            dimension_semantics=("parallel", "arbitrary"),
            vmem_limit_bytes=_VMEM_LIMIT),
    )(x2d, wdr, bdr, wdc, bdc, wkn, bkn, wv, bv)


# --------------------------------------------------------------------------------------
# Flash-style attention kernel (online softmax, split nope/rope dots, shared k_rope)
# --------------------------------------------------------------------------------------

def _flash_attn_kernel(qn_ref, qr_ref, kn_ref, kr_ref, v_ref, o_ref,
                       m_sc, l_sc, acc_sc):
    ki = pl.program_id(3)

    @pl.when(ki == 0)
    def _():
        m_sc[...] = jnp.full(m_sc.shape, -jnp.inf, dtype=m_sc.dtype)
        l_sc[...] = jnp.zeros_like(l_sc)
        acc_sc[...] = jnp.zeros_like(acc_sc)

    # Softmax scale is already folded into the q up-projection weights (wrapper),
    # so q is used as-is — no per-kv-step VALU scaling.
    qn = qn_ref[0, 0]                  # [tq, dn]  (bf16)
    qr = qr_ref[0, 0]                  # [tq, dr]
    kn = kn_ref[0, 0]                  # [tk, dn]
    kr = kr_ref[0, 0]                  # [tk, dr]  (shared across heads via index_map)
    v = v_ref[0, 0]                    # [tk, dv]

    # Split nope/rope score dots -> no concatenated key, no per-head k_rope broadcast.
    # (On v6e/v7x a single fused K=dn+dr dot would fill the 256-deep MXU better, but it
    #  requires duplicating k_rope per head in HBM — only worth it when not HBM-bound.)
    s = (jnp.dot(qn, kn.T, preferred_element_type=jnp.float32)
         + jnp.dot(qr, kr.T, preferred_element_type=jnp.float32))   # [tq, tk] f32

    m_prev = m_sc[...]
    m_new = jnp.maximum(m_prev, jnp.max(s, axis=-1, keepdims=True))
    alpha = jnp.exp(m_prev - m_new)
    p = jnp.exp(s - m_new)
    l_sc[...] = alpha * l_sc[...] + jnp.sum(p, axis=-1, keepdims=True)
    acc_sc[...] = alpha * acc_sc[...] + jnp.dot(
        p.astype(v.dtype), v, preferred_element_type=jnp.float32)
    m_sc[...] = m_new

    @pl.when(ki == pl.num_programs(3) - 1)
    def _():
        o_ref[0, 0] = (acc_sc[...] * pl.reciprocal(l_sc[...], approx=True)
                       ).astype(o_ref.dtype)


def flash_mla_attention(q_nope, q_rope, k_nope, k_rope, value, *, tq=512, tk=256):
    # q_nope/q_rope/k_nope/value: [B, nh, S, *], k_rope: [B, 1, S, dr]
    # Tile defaults: v5e/v6e favour large tq (K/V HBM traffic ∝ S/tq); on v7x (64 MiB
    # VMEM, faster HBM) 256–512 is already at roofline.  v5e: consider tk=128 if the
    # softmax VALU/EUP work is the binding slot.
    B, nh, S, dn = q_nope.shape
    dr = q_rope.shape[-1]
    dv = value.shape[-1]
    g = _granule(q_nope.dtype)
    tq = _pick_tile(S, tq, g)
    tk = _pick_tile(S, tk, g)
    return pl.pallas_call(
        _flash_attn_kernel,
        out_shape=jax.ShapeDtypeStruct((B, nh, S, dv), q_nope.dtype),
        grid=(B, nh, S // tq, S // tk),
        in_specs=[
            pl.BlockSpec((1, 1, tq, dn), lambda b, h, qi, ki: (b, h, qi, 0)),
            pl.BlockSpec((1, 1, tq, dr), lambda b, h, qi, ki: (b, h, qi, 0)),
            pl.BlockSpec((1, 1, tk, dn), lambda b, h, qi, ki: (b, h, ki, 0)),
            pl.BlockSpec((1, 1, tk, dr), lambda b, h, qi, ki: (b, 0, ki, 0)),
            pl.BlockSpec((1, 1, tk, dv), lambda b, h, qi, ki: (b, h, ki, 0)),
        ],
        out_specs=pl.BlockSpec((1, 1, tq, dv), lambda b, h, qi, ki: (b, h, qi, 0)),
        scratch_shapes=[
            pltpu.VMEM((tq, 1), jnp.float32),    # running max
            pltpu.VMEM((tq, 1), jnp.float32),    # running denom
            pltpu.VMEM((tq, dv), jnp.float32),   # output accumulator
        ],
        compiler_params=pltpu.CompilerParams(
            dimension_semantics=("parallel", "parallel", "parallel", "arbitrary"),
            vmem_limit_bytes=_VMEM_LIMIT),
    )(q_nope, q_rope, k_nope, k_rope, value)


# --------------------------------------------------------------------------------------
# Output projection: consumes [B, nh, S, dv] directly, reduces over heads w/ f32 acc
# --------------------------------------------------------------------------------------

def _out_proj_kernel(a_ref, w_ref, b_ref, o_ref, acc_ref):
    h = pl.program_id(2)

    @pl.when(h == 0)
    def _():
        acc_ref[...] = jnp.zeros_like(acc_ref)

    acc_ref[...] += jnp.dot(a_ref[0, 0], w_ref[0], preferred_element_type=jnp.float32)

    @pl.when(h == pl.num_programs(2) - 1)
    def _():
        o_ref[0] = (acc_ref[...] + b_ref[...]).astype(o_ref.dtype)


def output_projection(attn, w3, b2, out_dtype, *, ts=512):
    # attn: [B, nh, S, dv] (bf16), w3: [nh, dv, H] (bf16), b2: [1, H] (f32)
    B, nh, S, dv = attn.shape
    H = w3.shape[-1]
    ts = _pick_tile(S, ts, _granule(attn.dtype))
    return pl.pallas_call(
        _out_proj_kernel,
        out_shape=jax.ShapeDtypeStruct((B, S, H), out_dtype),
        grid=(B, S // ts, nh),
        in_specs=[
            pl.BlockSpec((1, 1, ts, dv), lambda b, si, h: (b, h, si, 0)),
            pl.BlockSpec((1, dv, H), lambda b, si, h: (h, 0, 0)),
            pl.BlockSpec((1, H), lambda b, si, h: (0, 0), pipeline_mode=pl.Buffered(1)),
        ],
        out_specs=pl.BlockSpec((1, ts, H), lambda b, si, h: (b, si, 0)),
        scratch_shapes=[pltpu.VMEM((ts, H), jnp.float32)],
        compiler_params=pltpu.CompilerParams(
            dimension_semantics=("parallel", "parallel", "arbitrary"),
            vmem_limit_bytes=_VMEM_LIMIT),
    )(attn, w3, b2)


# --------------------------------------------------------------------------------------
# RoPE (cheap elementwise glue in plain JAX on small [B,S,*] tensors, f32 math)
# --------------------------------------------------------------------------------------

def apply_rope(q_rope, k_rope, dim):
    # q_rope: [B, S, nh, dim], k_rope: [B, S, dim]
    dtype = q_rope.dtype
    S = q_rope.shape[1]
    pos = jnp.arange(S, dtype=jnp.float32)
    inv_freq = 1.0 / (10000.0 ** (jnp.arange(0, dim, 2, dtype=jnp.float32) / dim))
    freqs = pos[:, None] * inv_freq[None, :]                     # [S, dim/2]
    cos = jnp.concatenate([jnp.cos(freqs), jnp.cos(freqs)], -1)  # [S, dim]
    sin = jnp.concatenate([jnp.sin(freqs), jnp.sin(freqs)], -1)

    def rot(x):
        x1, x2 = x[..., : dim // 2], x[..., dim // 2:]
        return jnp.concatenate([-x2, x1], axis=-1)

    q32 = q_rope.astype(jnp.float32)
    k32 = k_rope.astype(jnp.float32)
    q_out = q32 * cos[None, :, None, :] + rot(q32) * sin[None, :, None, :]
    k_out = k32 * cos[None, :, :] + rot(k32) * sin[None, :, :]
    return q_out.astype(dtype), k_out.astype(dtype)


# --------------------------------------------------------------------------------------
# Weight reshuffles (one-time, exact column permutations of the PyTorch parameters)
# --------------------------------------------------------------------------------------

def _split_up_proj(w, b, nh, d1, d2):
    # w: [R, nh*(d1+d2)], b: [nh*(d1+d2)] -> per-head column split into d1 / d2 parts.
    R = w.shape[0]
    w3 = w.reshape(R, nh, d1 + d2)
    b2 = b.reshape(nh, d1 + d2)
    w_a = w3[:, :, :d1].reshape(R, nh * d1)
    w_b = w3[:, :, d1:].reshape(R, nh * d2)
    b_a = b2[:, :d1].reshape(1, nh * d1)
    b_b = b2[:, d1:].reshape(1, nh * d2)
    return w_a, b_a, w_b, b_b


# --------------------------------------------------------------------------------------
# MLA forward
# --------------------------------------------------------------------------------------

def mla_forward(params, X, cfg, *, act_dtype=jnp.bfloat16):
    B, S, H = X.shape
    nh = cfg["num_heads"]
    dn = cfg["qk_nope_head_dim"]
    dr = cfg["qk_rope_head_dim"]
    dv = cfg["v_head_dim"]

    # bf16 MXU operands everywhere; accumulation stays f32 inside the kernels.
    x2d = X.reshape(B * S, H).astype(act_dtype)
    as_act = lambda a: a.astype(act_dtype)

    # One-time weight splits + softmax-scale folding into the q up-projection
    # (RoPE is a rotation -> pre-scaling q_rope commutes with it).
    scale = 1.0 / math.sqrt(dn + dr)
    q_wn, q_bn, q_wr, q_br = _split_up_proj(params["q_up_w"], params["q_up_b"], nh, dn, dr)
    q_wn, q_bn, q_wr, q_br = q_wn * scale, q_bn * scale, q_wr * scale, q_br * scale
    kv_wn, kv_bn, kv_wv, kv_bv = _split_up_proj(params["kv_up_w"], params["kv_up_b"], nh, dn, dv)
    wdr, wdc = params["kv_down_w"][:, :dr], params["kv_down_w"][:, dr:]
    bdr = params["kv_down_b"][:dr].reshape(1, -1)
    bdc = params["kv_down_b"][dr:].reshape(1, -1)

    # fused query path: down-proj -> RMSNorm -> up-proj (nope / rope as two outputs)
    qn2d, qr2d = fused_q_projection(
        x2d, as_act(params["q_down_w"]), params["q_down_b"].reshape(1, -1),
        as_act(q_wn), q_bn, as_act(q_wr), q_br, nh)

    # fused kv path: down-proj -> (k_rope | RMSNorm -> up-proj -> k_nope / value)
    kr2d, kn2d, v2d = fused_kv_projection(
        x2d, as_act(wdr), bdr, as_act(wdc), bdc,
        as_act(kv_wn), kv_bn, as_act(kv_wv), kv_bv, nh)

    # RoPE (k_rope stays un-broadcast across heads)
    q_rope = qr2d.reshape(B, S, nh, dr)
    k_rope = kr2d.reshape(B, S, dr)
    q_rope, k_rope = apply_rope(q_rope, k_rope, dr)

    # per-head layout for the attention kernel
    q_nope = qn2d.reshape(B, S, nh, dn).transpose(0, 2, 1, 3)   # [B, nh, S, dn]
    q_rope = q_rope.transpose(0, 2, 1, 3)                       # [B, nh, S, dr]
    k_nope = kn2d.reshape(B, S, nh, dn).transpose(0, 2, 1, 3)   # [B, nh, S, dn]
    value = v2d.reshape(B, S, nh, dv).transpose(0, 2, 1, 3)     # [B, nh, S, dv]
    k_rope = k_rope[:, None]                                    # [B, 1,  S, dr]

    attn = flash_mla_attention(q_nope, q_rope, k_nope, k_rope, value)

    # output projection fuses the head reduction (no transpose-back of attn output)
    out = output_projection(attn, as_act(params["out_w"].reshape(nh, dv, H)),
                            params["out_b"].reshape(1, H), X.dtype)
    return out


# --------------------------------------------------------------------------------------
# Deterministic parameter init (PyTorch nn.Linear-style uniform)
# --------------------------------------------------------------------------------------

def _init_linear(key, din, dout):
    kw, kb = jax.random.split(key)
    bound = 1.0 / math.sqrt(din)
    w = jax.random.uniform(kw, (din, dout), jnp.float32, -bound, bound)
    b = jax.random.uniform(kb, (dout,), jnp.float32, -bound, bound)
    return w, b


def init_params(key, cfg):
    H = cfg["hidden_dim"]
    nh = cfg["num_heads"]
    dn = cfg["qk_nope_head_dim"]
    dr = cfg["qk_rope_head_dim"]
    dv = cfg["v_head_dim"]
    keys = jax.random.split(key, 5)
    p = {}
    p["q_down_w"], p["q_down_b"] = _init_linear(keys[0], H, cfg["q_lora_rank"])
    p["q_up_w"], p["q_up_b"] = _init_linear(keys[1], cfg["q_lora_rank"], nh * (dn + dr))
    p["kv_down_w"], p["kv_down_b"] = _init_linear(keys[2], H, dr + cfg["kv_lora_rank"])
    p["kv_up_w"], p["kv_up_b"] = _init_linear(keys[3], cfg["kv_lora_rank"], nh * (dn + dv))
    p["out_w"], p["out_b"] = _init_linear(keys[4], nh * dv, H)
    return p


# --------------------------------------------------------------------------------------
# Main
# --------------------------------------------------------------------------------------

if __name__ == "__main__":
    cfg = dict(
        hidden_dim=32,
        num_heads=2,
        dropout_rate=0.0,
        q_lora_rank=16,
        qk_nope_head_dim=16,
        qk_rope_head_dim=8,
        kv_lora_rank=16,
        v_head_dim=16,
    )
    B, S = 2, 8

    root = jax.random.PRNGKey(0)
    k_params, k_x = jax.random.split(root)
    params = init_params(k_params, cfg)
    X = jax.random.normal(k_x, (B, S, cfg["hidden_dim"]), jnp.float32)

    out = mla_forward(params, X, cfg)
    out = jax.block_until_ready(out)

    assert out.shape == (B, S, cfg["hidden_dim"]), out.shape
    assert bool(jnp.all(jnp.isfinite(out)))
    print("KERNEL_OK")
</pallas_src>

<mosaic_0001>
module attributes {stable_mosaic.version = 11 : i64} {
  func.func @_fused_q_kernel(%arg0: i32, %arg1: i32, %arg2: memref<16x32xbf16, #tpu.memory_space<vmem>>, %arg3: memref<32x16xbf16, #tpu.memory_space<vmem>>, %arg4: memref<1x16xf32, #tpu.memory_space<vmem>>, %arg5: memref<16x32xbf16, #tpu.memory_space<vmem>>, %arg6: memref<1x32xf32, #tpu.memory_space<vmem>>, %arg7: memref<16x16xbf16, #tpu.memory_space<vmem>>, %arg8: memref<1x16xf32, #tpu.memory_space<vmem>>, %arg9: memref<16x32xbf16, #tpu.memory_space<vmem>>, %arg10: memref<16x16xbf16, #tpu.memory_space<vmem>>, %arg11: memref<16x16xbf16, #tpu.memory_space<vmem>>) attributes {dimension_semantics = [#tpu.dimension_semantics<parallel>, #tpu.dimension_semantics<arbitrary>], iteration_bounds = array<i64: 1, 1>, scalar_prefetch = 0 : i64, scratch_operands = 1 : i64, tpu.core_type = #tpu.core_type<tc>, window_params = [{transform_indices = @transform_0, window_bounds = array<i64: 16, 32>}, {pipeline_mode = #tpu.pipeline_mode<synchronous>, transform_indices = @transform_1, window_bounds = array<i64: 32, 16>}, {pipeline_mode = #tpu.pipeline_mode<synchronous>, transform_indices = @transform_2, window_bounds = array<i64: 1, 16>}, {transform_indices = @transform_3, window_bounds = array<i64: 16, 32>}, {transform_indices = @transform_4, window_bounds = array<i64: 1, 32>}, {transform_indices = @transform_5, window_bounds = array<i64: 16, 16>}, {transform_indices = @transform_6, window_bounds = array<i64: 1, 16>}, {transform_indices = @transform_7, window_bounds = array<i64: 16, 32>}, {transform_indices = @transform_8, window_bounds = array<i64: 16, 16>}]} {
    %c0_i32 = arith.constant 0 : i32
    %0 = arith.cmpi eq, %arg1, %c0_i32 : i32
    %1 = arith.extui %0 : i1 to i32
    %c0_i32_0 = arith.constant 0 : i32
    %2 = arith.cmpi ne, %1, %c0_i32_0 : i32
    scf.if %2 {
      %c0_15 = arith.constant 0 : index
      %c0_16 = arith.constant 0 : index
      %18 = vector.load %arg2[%c0_15, %c0_16] : memref<16x32xbf16, #tpu.memory_space<vmem>>, vector<16x32xbf16>
      %c0_17 = arith.constant 0 : index
      %c0_18 = arith.constant 0 : index
      %19 = vector.load %arg3[%c0_17, %c0_18] : memref<32x16xbf16, #tpu.memory_space<vmem>>, vector<32x16xbf16>
      %cst_19 = arith.constant dense<0.000000e+00> : vector<16x16xf32>
      %20 = tpu.matmul %18, %19, %cst_19 {dimension_numbers = #tpu.dot_dimension_numbers<[1], [0], [0], [1], [0, 0, 1, 1], [], []>} : vector<16x32xbf16>, vector<32x16xbf16>, vector<16x16xf32> -> vector<16x16xf32>
      %c0_20 = arith.constant 0 : index
      %c0_21 = arith.constant 0 : index
      %21 = vector.load %arg4[%c0_20, %c0_21] : memref<1x16xf32, #tpu.memory_space<vmem>>, vector<1x16xf32>
      %22 = vector.broadcast %21 : vector<1x16xf32> to vector<16x16xf32>
      %23 = arith.addf %20, %22 : vector<16x16xf32>
      %24 = arith.mulf %23, %23 : vector<16x16xf32>
      %cst_22 = arith.constant dense<0.000000e+00> : vector<16xf32>
      %25 = vector.multi_reduction <add>, %24, %cst_22 [1] : vector<16x16xf32> to vector<16xf32>
      %26 = vector.shape_cast %25 : vector<16xf32> to vector<16x1xf32>
      %cst_23 = arith.constant 1.600000e+01 : f32
      %27 = vector.broadcast %cst_23 : f32 to vector<16x1xf32>
      %28 = arith.divf %26, %27 : vector<16x1xf32>
      %cst_24 = arith.constant 9.99999997E-7 : f32
      %29 = vector.broadcast %cst_24 : f32 to vector<16x1xf32>
      %30 = arith.addf %28, %29 : vector<16x1xf32>
      %31 = math.rsqrt %30 : vector<16x1xf32>
      %32 = vector.broadcast %31 : vector<16x1xf32> to vector<16x16xf32>
      %33 = arith.mulf %23, %32 : vector<16x16xf32>
      %34 = arith.truncf %33 : vector<16x16xf32> to vector<16x16xbf16>
      %c0_25 = arith.constant 0 : index
      %c0_26 = arith.constant 0 : index
      %35 = vector.load %arg11[%c0_25, %c0_26] : memref<16x16xbf16, #tpu.memory_space<vmem>>, vector<16x16xbf16>
      tpu.vector_store %arg11[%c0_25, %c0_26], %34 {strides = array<i32>} : memref<16x16xbf16, #tpu.memory_space<vmem>>, vector<16x16xbf16>,
    } else {
    }
    %c0 = arith.constant 0 : index
    %c0_1 = arith.constant 0 : index
    %3 = vector.load %arg11[%c0, %c0_1] : memref<16x16xbf16, #tpu.memory_space<vmem>>, vector<16x16xbf16>
    %c0_2 = arith.constant 0 : index
    %c0_3 = arith.constant 0 : index
    %4 = vector.load %arg5[%c0_2, %c0_3] : memref<16x32xbf16, #tpu.memory_space<vmem>>, vector<16x32xbf16>
    %cst = arith.constant dense<0.000000e+00> : vector<16x32xf32>
    %5 = tpu.matmul %3, %4, %cst {dimension_numbers = #tpu.dot_dimension_numbers<[1], [0], [0], [1], [0, 0, 1, 1], [], []>} : vector<16x16xbf16>, vector<16x32xbf16>, vector<16x32xf32> -> vector<16x32xf32>
    %c0_4 = arith.constant 0 : index
    %c0_5 = arith.constant 0 : index
    %6 = vector.load %arg6[%c0_4, %c0_5] : memref<1x32xf32, #tpu.memory_space<vmem>>, vector<1x32xf32>
    %7 = vector.broadcast %6 : vector<1x32xf32> to vector<16x32xf32>
    %8 = arith.addf %5, %7 : vector<16x32xf32>
    %9 = arith.truncf %8 : vector<16x32xf32> to vector<16x32xbf16>
    %c0_6 = arith.constant 0 : index
    %c0_7 = arith.constant 0 : index
    %10 = vector.load %arg9[%c0_6, %c0_7] : memref<16x32xbf16, #tpu.memory_space<vmem>>, vector<16x32xbf16>
    tpu.vector_store %arg9[%c0_6, %c0_7], %9 {strides = array<i32>} : memref<16x32xbf16, #tpu.memory_space<vmem>>, vector<16x32xbf16>,
    %c0_8 = arith.constant 0 : index
    %c0_9 = arith.constant 0 : index
    %11 = vector.load %arg7[%c0_8, %c0_9] : memref<16x16xbf16, #tpu.memory_space<vmem>>, vector<16x16xbf16>
    %cst_10 = arith.constant dense<0.000000e+00> : vector<16x16xf32>
    %12 = tpu.matmul %3, %11, %cst_10 {dimension_numbers = #tpu.dot_dimension_numbers<[1], [0], [0], [1], [0, 0, 1, 1], [], []>} : vector<16x16xbf16>, vector<16x16xbf16>, vector<16x16xf32> -> vector<16x16xf32>
    %c0_11 = arith.constant 0 : index
    %c0_12 = arith.constant 0 : index
    %13 = vector.load %arg8[%c0_11, %c0_12] : memref<1x16xf32, #tpu.memory_space<vmem>>, vector<1x16xf32>
    %14 = vector.broadcast %13 : vector<1x16xf32> to vector<16x16xf32>
    %15 = arith.addf %12, %14 : vector<16x16xf32>
    %16 = arith.truncf %15 : vector<16x16xf32> to vector<16x16xbf16>
    %c0_13 = arith.constant 0 : index
    %c0_14 = arith.constant 0 : index
    %17 = vector.load %arg10[%c0_13, %c0_14] : memref<16x16xbf16, #tpu.memory_space<vmem>>, vector<16x16xbf16>
    tpu.vector_store %arg10[%c0_13, %c0_14], %16 {strides = array<i32>} : memref<16x16xbf16, #tpu.memory_space<vmem>>, vector<16x16xbf16>,
    return
  }
  func.func @transform_0(%arg0: i32, %arg1: i32) -> (i32, i32) {
    %c0_i32 = arith.constant 0 : i32
    %c0_i32_0 = arith.constant 0 : i32
    return %arg0, %c0_i32 : i32, i32
  }
  func.func @transform_1(%arg0: i32, %arg1: i32) -> (i32, i32) {
    %c0_i32 = arith.constant 0 : i32
    %c0_i32_0 = arith.constant 0 : i32
    %c0_i32_1 = arith.constant 0 : i32
    return %c0_i32, %c0_i32_0 : i32, i32
  }
  func.func @transform_2(%arg0: i32, %arg1: i32) -> (i32, i32) {
    %c0_i32 = arith.constant 0 : i32
    %c0_i32_0 = arith.constant 0 : i32
    %c0_i32_1 = arith.constant 0 : i32
    return %c0_i32, %c0_i32_0 : i32, i32
  }
  func.func @transform_3(%arg0: i32, %arg1: i32) -> (i32, i32) {
    %c0_i32 = arith.constant 0 : i32
    %c0_i32_0 = arith.constant 0 : i32
    return %c0_i32, %arg1 : i32, i32
  }
  func.func @transform_4(%arg0: i32, %arg1: i32) -> (i32, i32) {
    %c0_i32 = arith.constant 0 : i32
    %c0_i32_0 = arith.constant 0 : i32
    return %c0_i32, %arg1 : i32, i32
  }
  func.func @transform_5(%arg0: i32, %arg1: i32) -> (i32, i32) {
    %c0_i32 = arith.constant 0 : i32
    %c0_i32_0 = arith.constant 0 : i32
    return %c0_i32, %arg1 : i32, i32
  }
  func.func @transform_6(%arg0: i32, %arg1: i32) -> (i32, i32) {
    %c0_i32 = arith.constant 0 : i32
    %c0_i32_0 = arith.constant 0 : i32
    return %c0_i32, %arg1 : i32, i32
  }
  func.func @transform_7(%arg0: i32, %arg1: i32) -> (i32, i32) {
    %c0_i32 = arith.constant 0 : i32
    return %arg0, %arg1 : i32, i32
  }
  func.func @transform_8(%arg0: i32, %arg1: i32) -> (i32, i32) {
    %c0_i32 = arith.constant 0 : i32
    return %arg0, %arg1 : i32, i32
  }
}

</mosaic_0001>

<bundles_post_ra>
// kernel: tpu_custom_call.1
= control target key start
LH: loop header
LB: loop body
LE: loop exit
PB: predicated region body
PF: predicated region fallthrough
CT: control target
= control target key end

     0   :  { %14 = vsyncpa [#allocation4], 0  ;;  %s878_s0 = inlined_call_operand.hbm [shape: bf16[16,32], index: 0, kind: input, shape index: {}]   ;;  %s879_s1 = inlined_call_operand.hbm [shape: bf16[32,16], index: 1, kind: input, shape index: {}]   ;;  %s880_s2 = inlined_call_operand.hbm [shape: f32[1,16], index: 2, kind: input, shape index: {}]   ;;  %s881_s3 = inlined_call_operand.hbm [shape: bf16[16,32], index: 3, kind: input, shape index: {}]   ;;  %s882_s4 = inlined_call_operand.hbm [shape: f32[1,32], index: 4, kind: input, shape index: {}]   ;;  %s883_s5 = inlined_call_operand.hbm [shape: bf16[16,16], index: 5, kind: input, shape index: {}]   ;;  %s884_s6 = inlined_call_operand.hbm [shape: f32[1,16], index: 6, kind: input, shape index: {}]   ;;  %s885_s7 = inlined_call_operand.hbm [shape: bf16[16,32], index: 7, kind: output, shape index: {0}]   ;;  %s886_s8 = inlined_call_operand.hbm [shape: bf16[16,16], index: 8, kind: output, shape index: {1}]  }
   0x1   :  { %15 = vsyncpa [#allocation7], 0 }
   0x2   :  { %16 = vsyncpa [#allocation10], 0 }
   0x3   :  { %17 = vsyncpa [#allocation13], 0 }
   0x4   :  { %18 = vsyncpa [#allocation5], 0 }
   0x5   :  { %19 = vsyncpa [#allocation17], 0  ;;  %s672_s27 = smov [#allocation6]   ;;  %s673_s29 = smov [#allocation9]  }
   0x6   :  { %s37_s28 = sshll.u32 %s672_s27, 4  ;;  %s59_s30 = sshll.u32 %s673_s29, 4  ;;  %s38_s28 = int_to_ptr.vmem [resolvable:$true] %s37_s28  ;;  %s730_s30 = int_to_ptr.vmem [resolvable:$true] %s59_s30 }
   0x7   :  { %s462_s11 = scalar_lea.hbm %s879_s1, 256 }
   0x8   :  { %p463_p0 = scmp.ne.s32.totalorder %s879_s1, %s462_s11  ;;  %p466_p1 = scmp.lt.u32.totalorder %s462_s11, %s879_s1 }
   0xa   :  { %p468_p2 = pnand %p466_p1, %p463_p0 }
   0xc   :  { %471 = shalt.err (!%p468_p2)
}
   0xd   :  { %s472_s16 = scalar_lea.vmem %s38_s28, 256  ;;  %p477_p4 = scmp.lt.s32.totalorder %s38_s28, %s38_s28 }
   0xe   :  { %p473_p3 = scmp.ne.s32.totalorder %s38_s28, %s472_s16  ;;  %p478_p5 = scmp.lt.s32.totalorder %s472_s16, %s472_s16 }
  0x10   :  { %p479_p6 = por %p478_p5, %p477_p4 }
  0x12   :  { %p480_p7 = pnand %p479_p6, %p473_p3 }
  0x14   :  { %483 = shalt.err (!%p480_p7)
}
  0x15   :  { %s674_s17 = smov 64   ;;  %s675_s18 = smov 4  }
  0x16   :  { %43 = dma.hbm_to_vmem [thread:$0]  %s879_s1, 256, %s38_s28, [#allocation7], %s674_s17, %s674_s17, %s675_s18  }
  0x17   :  { %s484_s23 = scalar_lea.hbm %s881_s3, 128 }
  0x18   :  { %p485_p8 = scmp.ne.s32.totalorder %s881_s3, %s484_s23  ;;  %p488_p9 = scmp.lt.u32.totalorder %s484_s23, %s881_s3 }
  0x1a   :  { %p490_p10 = pnand %p488_p9, %p485_p8 }
  0x1c   :  { %493 = shalt.err (!%p490_p10)
}
  0x1d   :  { %s494_s29 = scalar_lea.vmem %s730_s30, 128  ;;  %p499_p12 = scmp.lt.s32.totalorder %s730_s30, %s730_s30 }
  0x1e   :  { %p495_p11 = scmp.ne.s32.totalorder %s730_s30, %s494_s29  ;;  %p500_p13 = scmp.lt.s32.totalorder %s494_s29, %s494_s29 }
  0x20   :  { %p501_p0 = por %p500_p13, %p499_p12 }
  0x22   :  { %p502_p1 = pnand %p501_p0, %p495_p11 }
  0x24   :  { %505 = shalt.err (!%p502_p1)
}
  0x25   :  { %65 = dma.hbm_to_vmem [thread:$0]  %s881_s3, 128, %s730_s30, [#allocation10], %s674_s17, %s674_s17, %s675_s18  }
  0x26   :  { %s676_s9 = smov [#allocation12]   ;;  %s677_s11 = smov [#allocation3]  }
  0x27   :  { %s81_s10 = sshll.u32 %s676_s9, 4  ;;  %s25_s12 = sshll.u32 %s677_s11, 4  ;;  %s82_s10 = int_to_ptr.vmem [resolvable:$true] %s81_s10  ;;  %s767_s12 = int_to_ptr.vmem [resolvable:$true] %s25_s12 }
  0x28   :  { %s506_s15 = scalar_lea.hbm %s883_s5, 128 }
  0x29   :  { %p507_p2 = scmp.ne.s32.totalorder %s883_s5, %s506_s15  ;;  %p510_p3 = scmp.lt.u32.totalorder %s506_s15, %s883_s5 }
  0x2b   :  { %p512_p4 = pnand %p510_p3, %p507_p2 }
  0x2d   :  { %515 = shalt.err (!%p512_p4)
}
  0x2e   :  { %s516_s3 = scalar_lea.vmem %s82_s10, 128  ;;  %p521_p6 = scmp.lt.s32.totalorder %s82_s10, %s82_s10 }
  0x2f   :  { %p517_p5 = scmp.ne.s32.totalorder %s82_s10, %s516_s3  ;;  %p522_p7 = scmp.lt.s32.totalorder %s516_s3, %s516_s3 }
  0x31   :  { %p523_p8 = por %p522_p7, %p521_p6 }
  0x33   :  { %p524_p9 = pnand %p523_p8, %p517_p5 }
  0x35   :  { %527 = shalt.err (!%p524_p9)
}
  0x36   :  { %87 = dma.hbm_to_vmem [thread:$0]  %s883_s5, 128, %s82_s10, [#allocation13], %s674_s17, %s674_s17, %s675_s18  }
  0x37   :  { %s528_s25 = scalar_lea.hbm %s878_s0, 128 }
  0x38   :  { %p529_p10 = scmp.ne.s32.totalorder %s878_s0, %s528_s25  ;;  %p532_p11 = scmp.lt.u32.totalorder %s528_s25, %s878_s0 }
  0x3a   :  { %p534_p12 = pnand %p532_p11, %p529_p10 }
  0x3c   :  { %537 = shalt.err (!%p534_p12)
}
  0x3d   :  { %s538_s28 = scalar_lea.vmem %s767_s12, 128  ;;  %p543_p0 = scmp.lt.s32.totalorder %s767_s12, %s767_s12 }
  0x3e   :  { %p539_p13 = scmp.ne.s32.totalorder %s767_s12, %s538_s28  ;;  %p544_p1 = scmp.lt.s32.totalorder %s538_s28, %s538_s28 }
  0x40   :  { %p545_p2 = por %p544_p1, %p543_p0 }
  0x42   :  { %p546_p3 = pnand %p545_p2, %p539_p13 }
  0x44   :  { %549 = shalt.err (!%p546_p3)
}
  0x45   :  { %31 = dma.hbm_to_vmem [thread:$0]  %s878_s0, 128, %s767_s12, [#allocation4], %s674_s17, %s674_s17, %s675_s18  }
  0x46   :  { %s678_s10 = smov [#allocation8]   ;;  %s679_s13 = smov [#allocation11]  }
  0x47   :  { %s50_s11 = sshll.u32 %s678_s10, 4  ;;  %s72_s14 = sshll.u32 %s679_s13, 4  ;;  %s51_s11 = int_to_ptr.vmem [resolvable:$true] %s50_s11  ;;  %s73_s14 = int_to_ptr.vmem [resolvable:$true] %s72_s14 }
  0x48   :  { %s550_s19 = scalar_lea.hbm %s880_s2, 16 }
  0x49   :  { %p551_p4 = scmp.ne.s32.totalorder %s880_s2, %s550_s19  ;;  %p554_p5 = scmp.lt.u32.totalorder %s550_s19, %s880_s2 }
  0x4b   :  { %p556_p6 = pnand %p554_p5, %p551_p4 }
  0x4d   :  { %559 = shalt.err (!%p556_p6)
}
  0x4e   :  { %s560_s0 = scalar_lea.vmem %s51_s11, 16  ;;  %s564_s12 = scalar_lea.vmem %s51_s11, 32 }
  0x4f   :  { %p561_p7 = scmp.ne.s32.totalorder %s51_s11, %s560_s0  ;;  %p565_p8 = scmp.lt.s32.totalorder %s51_s11, %s51_s11 }
  0x50   :  { %p566_p9 = scmp.lt.s32.totalorder %s564_s12, %s560_s0 }
  0x52   :  { %p567_p10 = por %p566_p9, %p565_p8 }
  0x54   :  { %p568_p11 = pnand %p567_p10, %p561_p7 }
  0x56   :  { %571 = shalt.err (!%p568_p11)
}
  0x57   :  { %53 = dma.hbm_to_vmem [thread:$0]  %s880_s2, 16, %s51_s11, [#allocation7]  }
  0x58   :  { %s572_s26 = scalar_lea.hbm %s882_s4, 16 }
  0x59   :  { %p573_p12 = scmp.ne.s32.totalorder %s882_s4, %s572_s26  ;;  %p576_p13 = scmp.lt.u32.totalorder %s572_s26, %s882_s4 }
  0x5b   :  { %p578_p0 = pnand %p576_p13, %p573_p12 }
  0x5d   :  { %581 = shalt.err (!%p578_p0)
}
  0x5e   :  { %s582_s5 = scalar_lea.vmem %s73_s14, 16  ;;  %s586_s9 = scalar_lea.vmem %s73_s14, 32 }
  0x5f   :  { %p583_p1 = scmp.ne.s32.totalorder %s73_s14, %s582_s5  ;;  %p587_p2 = scmp.lt.s32.totalorder %s73_s14, %s73_s14 }
  0x60   :  { %p588_p3 = scmp.lt.s32.totalorder %s586_s9, %s582_s5 }
  0x62   :  { %p589_p4 = por %p588_p3, %p587_p2 }
  0x64   :  { %p590_p5 = pnand %p589_p4, %p583_p1 }
  0x66   :  { %593 = shalt.err (!%p590_p5)
}
  0x67   :  { %75 = dma.hbm_to_vmem [thread:$0]  %s882_s4, 16, %s73_s14, [#allocation10]  }
  0x68   :  { %s680_s11 = smov [#allocation14]   ;;  %s594_s19 = scalar_lea.hbm %s884_s6, 16 }
  0x69   :  { %s94_s13 = sshll.u32 %s680_s11, 4  ;;  %p595_p6 = scmp.ne.s32.totalorder %s884_s6, %s594_s19  ;;  %s95_s13 = int_to_ptr.vmem [resolvable:$true] %s94_s13 }
  0x6a   :  { %p598_p7 = scmp.lt.u32.totalorder %s594_s19, %s884_s6 }
  0x6c   :  { %p600_p8 = pnand %p598_p7, %p595_p6 }
  0x6e   :  { %603 = shalt.err (!%p600_p8)
}
  0x6f   :  { %s604_s0 = scalar_lea.vmem %s95_s13, 16  ;;  %s608_s4 = scalar_lea.vmem %s95_s13, 32 }
  0x70   :  { %p605_p9 = scmp.ne.s32.totalorder %s95_s13, %s604_s0  ;;  %p609_p10 = scmp.lt.s32.totalorder %s95_s13, %s95_s13 }
  0x71   :  { %p610_p11 = scmp.lt.s32.totalorder %s608_s4, %s604_s0 }
  0x73   :  { %p611_p12 = por %p610_p11, %p609_p10 }
  0x75   :  { %p612_p13 = pnand %p611_p12, %p605_p9 }
  0x77   :  { %615 = shalt.err (!%p612_p13)
}
  0x78   :  { %97 = dma.hbm_to_vmem [thread:$0]  %s884_s6, 16, %s95_s13, [#allocation13]  }
  0x79   :  { %660 = dma.done.wait [#allocation4], 128  }
  0x7a   :  { %661 = vsyncadd [#allocation4], 4294967168 }
  0x7b   :  { %662 = dma.done.wait [#allocation7], 272  }
  0x7c   :  { %663 = vsyncadd [#allocation7], 4294967024 }
  0x7d   :  { %664 = dma.done.wait [#allocation10], 144  }
  0x7e   :  { %665 = vsyncadd [#allocation10], 4294967152 }
  0x7f   :  { %666 = dma.done.wait [#allocation13], 144  }
  0x80   :  { %667 = vsyncadd [#allocation13], 4294967152  ;;  %v681_v0 = vmov 0.0   ;;  %vm682_vm0 = vmmov 0   ;;  %v453_v1 = vld [vmem:[#allocation6] sm:$0xff]   ;;  %v454_v2 = vld [vmem:[#allocation6 + $0x8] sm:$0xff]  }
  0x81   :  { %420 = vmatprep.subr.bf16.mxu0 %v681_v0  ;;  %424 = vmatprep.mubr.msk.bf16.mxu0 %vm682_vm0, %v681_v0  ;;  %v455_v3 = vld [vmem:[#allocation3] sm:$0xff]   ;;  %vm154_vm1 = vcmask 261120   ;;  %v394_v4 = vld [vmem:[#allocation8] ss:$0 sm:$0xff]  ;;  %vm201_vm2 = vcmask 130048   ;;  %vm288_vm3 = vcmask 257024  }
  0x82   :  { %428 = vmatprep.subr.bf16.mxu1 %v681_v0  ;;  %430 = vmatprep.mubr.msk.bf16.mxu1 %vm682_vm0, %v681_v0  ;;  %v456_v15 = vld [vmem:[#allocation9] sm:$0xff]   ;;  %v457_v27 = vld [vmem:[#allocation12] sm:$0xff]   ;;  %v399_v29 = vld [vmem:[#allocation11] ss:$0 sm:$0xff]  ;;  %s683_s6 = smov [#allocation15]  }
  0x83   :  { %421 = vmatpush3.bf16.msra.mxu0 %v453_v1  ;;  %429 = vmatpush3.bf16.msra.mxu1 %v456_v15  ;;  %s363_s22 = sshll.u32 %s683_s6, 4  ;;  %v404_v38 = vld [vmem:[#allocation14] ss:$0 sm:$0xff]  ;;  %s364_s22 = int_to_ptr.vmem [resolvable:$true] %s363_s22 }
  0x84   :  { %422 = vmatprep.subr.bf16.mxu0 %v681_v0  ;;  %434 = vmatprep.subr.bf16.mxu1 %v681_v0  ;;  %s616_s23 = scalar_lea.vmem %s364_s22, 128  ;;  %p621_p1 = scmp.lt.s32.totalorder %s364_s22, %s364_s22 }
  0x85   :  { %p617_p0 = scmp.ne.s32.totalorder %s364_s22, %s616_s23  ;;  %p622_p2 = scmp.lt.s32.totalorder %s616_s23, %s616_s23 }
  0x87   :  { %423 = vmatpush3.bf16.msra.mxu0 %v454_v2  ;;  %p623_p3 = por %p622_p2, %p621_p1 }
  0x89   :  { %p624_p4 = pnand %p623_p3, %p617_p0 }
  0x8a   :  { %425 = vmatmul.mubr.msk.bf16.vlgmr.msra.gmra.mrb[0].mxu0 %vm154_vm1, %v455_v3 }
 0x15d   :  { %v192_v5 = vpop.f32.mrb[0].mxu0 }
 0x15e   :  { %v193_v6 = vadd.f32 %v394_v4, %v192_v5  ;;  %v426_v7 = vpop.f32.mrb[1].mxu0 }
 0x15f   :  { %v195_v8 = vpop.f32.mrb[2].mxu0 }
 0x160   :  { %v196_v9 = vadd.f32 %v394_v4, %v195_v8  ;;  %v427_v10 = vpop.f32.mrb[3].mxu0  ;;  %v199_v11 = vmul.f32 %v193_v6, %v193_v6 }
 0x162   :  { %v202_v12 = vsel %vm201_vm2, %v199_v11, 0.0  ;;  %v200_v13 = vmul.f32 %v196_v9, %v196_v9 }
 0x163   :  { %203 = vadd.xlane.f32.xlu0 %v202_v12 }
 0x164   :  { %v205_v14 = vsel %vm201_vm2, %v200_v13, 0.0 }
 0x167   :  { %206 = vadd.xlane.f32.xlu0 %v205_v14 }
 0x1f0   :  { %v204_v16 = vpop.xlane.xlu0 %203 }
 0x1f1   :  { %v209_v17 = vmul.f32 0.0625, %v204_v16 }
 0x1f3   :  { %v211_v18 = vadd.f32 1e-06, %v209_v17 }
 0x1f4   :  { %v207_v19 = vpop.xlane.xlu0 %206 }
 0x1f5   :  { %v210_v20 = vmul.f32 0.0625, %v207_v19  ;;  %458 = vrsqrt.f32 %v211_v18 }
 0x1f7   :  { %v212_v21 = vadd.f32 1e-06, %v210_v20 }
 0x1f9   :  { %460 = vrsqrt.f32 %v212_v21 }
 0x1ff   :  { %v459_v22 = vpop.eup %458 }
 0x200   :  { %v215_v24 = vmul.f32 %v459_v22, %v193_v6 }
 0x203   :  { %v461_v23 = vpop.eup %460 }
 0x204   :  { %v216_v25 = vmul.f32 %v461_v23, %v196_v9 }
 0x206   :  { %v217_v26 = vpack.c.bf16 %v216_v25, %v215_v24 }
 0x208   :  { %218 = vst.msk [vmem:[#allocation2] sm:$0xff] %vm201_vm2, %v217_v26 }
 0x20f   :  { %v219_v28 = vld [vmem:[#allocation2] sm:$0xff] }
 0x210   :  { %431 = vmatmul.mubr.msk.bf16.vlgmr.msra.gmra.mrb[0].mxu1 %vm201_vm2, %v219_v28 }
 0x211   :  { %435 = vmatpush3.bf16.msra.mxu1 %v457_v27  ;;  %436 = vmatprep.mubr.msk.bf16.mxu1 %vm682_vm0, %v681_v0 }
 0x218   :  { %437 = vmatmul.mubr.msk.bf16.vlgmr.msra.gmra.mrb[4].mxu1 %vm201_vm2, %v219_v28 }
 0x2e3   :  { %v273_v30 = vpop.f32.mrb[0].mxu1 }
 0x2e4   :  { %v274_v31 = vadd.f32 %v399_v29, %v273_v30  ;;  %v432_v32 = vpop.f32.mrb[1].mxu1 }
 0x2e5   :  { %v276_v33 = vpop.f32.mrb[2].mxu1 }
 0x2e6   :  { %v409_v34 = vpack.c.bf16 %v274_v31, %v274_v31  ;;  %v277_v35 = vadd.f32 %v399_v29, %v276_v33  ;;  %v433_v36 = vpop.f32.mrb[3].mxu1 }
 0x2e8   :  { %v410_v37 = vpack.c.bf16 %v277_v35, %v277_v35  ;;  %289 = vst.msk [vmem:[#allocation15] sm:$0xf] %vm288_vm3, %v409_v34 }
 0x2ea   :  { %290 = vst.msk [vmem:[#allocation15 + $0x4] sm:$0xf] %vm288_vm3, %v410_v37 }
 0x2eb   :  { %v340_v39 = vpop.f32.mrb[4].mxu1 }
 0x2ec   :  { %627 = shalt.err (!%p624_p4)
}
 0x2ed   :  { %s628_s26 = scalar_lea.hbm %s885_s7, 128 }
 0x2ee   :  { %p629_p5 = scmp.ne.s32.totalorder %s885_s7, %s628_s26  ;;  %p632_p6 = scmp.lt.u32.totalorder %s628_s26, %s885_s7 }
 0x2f0   :  { %p634_p7 = pnand %p632_p6, %p629_p5 }
 0x2f2   :  { %637 = shalt.err (!%p634_p7)
}
 0x2f3   :  { %369 = dma.vmem_to_hbm [thread:$0]  %s364_s22, 128, %s885_s7, [#allocation5], %s674_s17, %s674_s17, %s675_s18   ;;  %v341_v40 = vadd.f32 %v404_v38, %v340_v39  ;;  %v438_v41 = vpop.f32.mrb[5].mxu1  ;;  %vm355_vm4 = vcmask 125952  }
 0x2f4   :  { %v343_v42 = vpop.f32.mrb[6].mxu1  ;;  %s684_s2 = smov [#allocation16]  }
 0x2f5   :  { %s375_s10 = sshll.u32 %s684_s2, 4  ;;  %v411_v43 = vpack.c.bf16 %v341_v40, %v341_v40  ;;  %v344_v44 = vadd.f32 %v404_v38, %v343_v42  ;;  %v439_v45 = vpop.f32.mrb[7].mxu1  ;;  %s376_s10 = int_to_ptr.vmem [resolvable:$true] %s375_s10 }
 0x2f6   :  { %s638_s11 = scalar_lea.vmem %s376_s10, 128  ;;  %p643_p9 = scmp.lt.s32.totalorder %s376_s10, %s376_s10 }
 0x2f7   :  { %v412_v46 = vpack.c.bf16 %v344_v44, %v344_v44  ;;  %356 = vst.msk [vmem:[#allocation16] sm:$0xf] %vm355_vm4, %v411_v43  ;;  %p639_p8 = scmp.ne.s32.totalorder %s376_s10, %s638_s11  ;;  %p644_p10 = scmp.lt.s32.totalorder %s638_s11, %s638_s11 }
 0x2f9   :  { %357 = vst.msk [vmem:[#allocation16 + $0x4] sm:$0xf] %vm355_vm4, %v412_v46  ;;  %p645_p11 = por %p644_p10, %p643_p9 }
 0x2fb   :  { %p646_p12 = pnand %p645_p11, %p639_p8 }
 0x2fd   :  { %649 = shalt.err (!%p646_p12)
}
 0x2fe   :  { %s650_s15 = scalar_lea.hbm %s886_s8, 128 }
 0x2ff   :  { %p651_p13 = scmp.ne.s32.totalorder %s886_s8, %s650_s15  ;;  %p654_p0 = scmp.lt.u32.totalorder %s650_s15, %s886_s8 }
 0x301   :  { %p656_p1 = pnand %p654_p0, %p651_p13 }
 0x303   :  { %659 = shalt.err (!%p656_p1)
}
 0x304   :  { %381 = dma.vmem_to_hbm [thread:$0]  %s376_s10, 128, %s886_s8, [#allocation17], %s674_s17, %s674_s17, %s675_s18  }
 0x305   :  { %668 = dma.done.wait [#allocation5], 128  }
 0x306   :  { %669 = vsyncadd [#allocation5], 4294967168 }
 0x307   :  { %670 = dma.done.wait [#allocation17], 128  }
 0x308   :  { %671 = vsyncadd [#allocation17], 4294967168 }
 0x309   :  { %388 = vsyncpa [#allocation4], 1 }
 0x30a   :  { %389 = vsyncpa [#allocation7], 1 }
 0x30b   :  { %390 = vsyncpa [#allocation10], 1 }
 0x30c   :  { %391 = vsyncpa [#allocation13], 1 }
 0x30d   :  { %392 = vsyncpa [#allocation5], 1 }
 0x30e   :  { %393 = vsyncpa [#allocation17], 1 }

</bundles_post_ra>
